<compile_context>
chip_gen: v7x
topology: tpu7x:2x2x1
jax: 0.10.0
libtpu: 0.0.40
codegen_flags: <defaults>
</compile_context>

<pallas_src>
import jax
import jax.numpy as jnp
from jax.experimental import pallas as pl
from jax.experimental.pallas import tpu as pltpu

LANE = 128  # vreg lane width; one "group" = 128 input rows


def _linear_kernel(x_ref, r_ref, b_ref, o_ref):
    # x_ref: (TILE_G, 1024) VMEM -- 128 input rows x 8 features per block row (lane-dense)
    # r_ref: (1024, 128)    VMEM -- structured weight matrix, resident (constant block index)
    # b_ref: (1,)           SMEM -- bias scalar
    # o_ref: (TILE_G, 128)  VMEM -- lane-dense output slab: o[g, i] = y[g*128 + i]
    o_ref[...] = (
        jnp.dot(x_ref[...], r_ref[...], preferred_element_type=jnp.float32)
        + b_ref[0]
    )


def my_linear_regression_forward(x, weight, bias, *, tile_rows=65536,
                                 xla_fallback_rows=65536):
    """Forward pass of MyLinearRegression: y = x @ W.T + b.

    Args:
      x:      (N, 8) float32
      weight: (1, 8) float32  (PyTorch nn.Linear layout: (out_features, in_features))
      bias:   (1,)   float32
      tile_rows:         target input rows per grid step (rounded to 8*128-row blocks).
      xla_fallback_rows: below this N, use a plain fused XLA dot (kernel-launch and
                         layout costs dominate for small batches).
    Returns:
      (N, 1) float32
    """
    n, feat = x.shape
    x = x.astype(jnp.float32)
    w = weight.reshape(-1).astype(jnp.float32)   # (8,)
    b = bias.reshape(-1).astype(jnp.float32)     # (1,)

    if n < max(LANE, xla_fallback_rows):
        # Small/medium batch: fused XLA dot wins; also covers n < one 128-row group.
        return x @ w[:, None] + b[None, :]

    # ---- split off the (<128 row) ragged tail instead of padding the whole array ----
    n_main = (n // LANE) * LANE
    g_total = n_main // LANE

    # Bitcast reshape: (n_main, 8) row-major -> (g_total, 1024). No data movement when
    # n is a multiple of 128 (the common large-N case); otherwise only the prefix is
    # taken and the tiny tail is handled by XLA below.
    x_main = x[:n_main].reshape(g_total, feat * LANE)

    # Structured weight matrix R[k, k // feat] = w[k % feat]  == kron(I_128, w).
    # (1024, 128) f32 = 512 KiB, built once, resident in VMEM via constant block index.
    r = jnp.kron(jnp.eye(LANE, dtype=jnp.float32), w.reshape(feat, 1))

    # ---- tile sizing: big blocks, 8-group aligned, >= 2 grid steps when possible ----
    groups_cap = max(8, (tile_rows // LANE) // 8 * 8)      # groups per step (mult. of 8)
    tile_groups = min(groups_cap, g_total)
    if tile_groups == g_total and g_total >= 16:
        # Single-tile case with enough data: split into >= 2 grid steps so the
        # "parallel" axis shards across v7x's two TensorCores. Keep blocks a multiple
        # of 8 groups to satisfy the (8, 128) block-shape constraint.
        tile_groups = pl.cdiv(pl.cdiv(g_total, 2), 8) * 8
    num_tiles = pl.cdiv(g_total, tile_groups)               # partial last block is OK:
    # OOB input reads of the edge block are unspecified but only feed OOB (masked)
    # output rows, which never reach the user.

    cost = pl.CostEstimate(
        flops=16 * n_main,               # useful flops (MXU redundancy is free)
        transcendentals=0,
        bytes_accessed=36 * n_main + r.size * 4,
    )

    out = pl.pallas_call(
        _linear_kernel,
        out_shape=jax.ShapeDtypeStruct((g_total, LANE), jnp.float32),
        grid=(num_tiles,),
        in_specs=[
            pl.BlockSpec((tile_groups, feat * LANE), lambda i: (i, 0)),
            pl.BlockSpec((feat * LANE, LANE), lambda i: (0, 0)),     # R: fetched once
            pl.BlockSpec(memory_space=pltpu.MemorySpace.SMEM),       # bias scalar
        ],
        out_specs=pl.BlockSpec((tile_groups, LANE), lambda i: (i, 0)),
        compiler_params=pltpu.CompilerParams(
            dimension_semantics=("parallel",),   # shard batch tiles across TCs on v7x
        ),
        cost_estimate=cost,
    )(x_main, r, b)

    y_main = out.reshape(n_main, 1)
    if n_main == n:
        return y_main
    # Ragged tail (< 128 rows): plain XLA dot, negligible cost.
    y_tail = x[n_main:] @ w[:, None] + b[None, :]
    return jnp.concatenate([y_main, y_tail], axis=0)


if __name__ == "__main__":
    key = jax.random.PRNGKey(0)
    kx, kw, kb, kx2 = jax.random.split(key, 4)

    in_features = 8
    out_features = 1

    # Deterministic synthetic parameters, mimicking PyTorch's default
    # uniform(-1/sqrt(in_features), 1/sqrt(in_features)) init.
    bound = 1.0 / (in_features ** 0.5)
    weight = jax.random.uniform(kw, (out_features, in_features),
                                dtype=jnp.float32, minval=-bound, maxval=bound)
    bias = jax.random.uniform(kb, (out_features,),
                              dtype=jnp.float32, minval=-bound, maxval=bound)

    # Main check: 2048 rows -> 16 groups -> 2 parallel grid tiles of 8 groups each.
    # xla_fallback_rows=0 forces the Pallas path at this small demo size (the
    # production default keeps the XLA fallback for small/medium batches).
    batch = 2048
    x = jax.random.normal(kx, (batch, in_features), dtype=jnp.float32)
    out = jax.block_until_ready(
        my_linear_regression_forward(x, weight, bias, xla_fallback_rows=0))
    ref = x @ weight.T + bias[None, :]
    assert out.shape == (batch, out_features)
    assert jnp.allclose(out, ref, atol=1e-5, rtol=1e-5)

    # Ragged batch (not a multiple of 128): 896 rows via kernel + 104-row XLA tail.
    batch2 = 1000
    x2 = jax.random.normal(kx2, (batch2, in_features), dtype=jnp.float32)
    out2 = jax.block_until_ready(
        my_linear_regression_forward(x2, weight, bias, xla_fallback_rows=0))
    ref2 = x2 @ weight.T + bias[None, :]
    assert out2.shape == (batch2, out_features)
    assert jnp.allclose(out2, ref2, atol=1e-5, rtol=1e-5)

    print("KERNEL_OK")
</pallas_src>

<mosaic_0001>
module attributes {stable_mosaic.version = 11 : i64} {
  func.func @_linear_kernel(%arg0: i32, %arg1: memref<8x1024xf32, #tpu.memory_space<vmem>>, %arg2: memref<1024x128xf32, #tpu.memory_space<vmem>>, %arg3: memref<1xf32, #tpu.memory_space<smem>>, %arg4: memref<8x128xf32, #tpu.memory_space<vmem>>) attributes {dimension_semantics = [#tpu.dimension_semantics<parallel>], iteration_bounds = array<i64: 2>, scalar_prefetch = 0 : i64, scratch_operands = 0 : i64, tpu.core_type = #tpu.core_type<tc>, window_params = [{transform_indices = @transform_0, window_bounds = array<i64: 8, 1024>}, {pipeline_mode = #tpu.pipeline_mode<synchronous>, transform_indices = @transform_1, window_bounds = array<i64: 1024, 128>}, {transform_indices = @transform_2, window_bounds = array<i64: 1>}, {transform_indices = @transform_3, window_bounds = array<i64: 8, 128>}]} {
    %c0 = arith.constant 0 : index
    %c0_0 = arith.constant 0 : index
    %0 = vector.load %arg1[%c0, %c0_0] : memref<8x1024xf32, #tpu.memory_space<vmem>>, vector<8x1024xf32>
    %c0_1 = arith.constant 0 : index
    %c0_2 = arith.constant 0 : index
    %1 = vector.load %arg2[%c0_1, %c0_2] : memref<1024x128xf32, #tpu.memory_space<vmem>>, vector<1024x128xf32>
    %cst = arith.constant dense<0.000000e+00> : vector<8x128xf32>
    %2 = tpu.matmul %0, %1, %cst {dimension_numbers = #tpu.dot_dimension_numbers<[1], [0], [0], [1], [0, 0, 1, 1], [], []>} : vector<8x1024xf32>, vector<1024x128xf32>, vector<8x128xf32> -> vector<8x128xf32>
    %c0_3 = arith.constant 0 : index
    %3 = memref.load %arg3[%c0_3] : memref<1xf32, #tpu.memory_space<smem>>
    %4 = vector.broadcast %3 : f32 to vector<8x128xf32>
    %5 = arith.addf %2, %4 : vector<8x128xf32>
    %c0_4 = arith.constant 0 : index
    %c0_5 = arith.constant 0 : index
    %6 = vector.load %arg4[%c0_4, %c0_5] : memref<8x128xf32, #tpu.memory_space<vmem>>, vector<8x128xf32>
    tpu.vector_store %arg4[%c0_4, %c0_5], %5 {strides = array<i32>} : memref<8x128xf32, #tpu.memory_space<vmem>>, vector<8x128xf32>,
    return
  }
  func.func @transform_0(%arg0: i32) -> (i32, i32) {
    %c0_i32 = arith.constant 0 : i32
    %c0_i32_0 = arith.constant 0 : i32
    return %arg0, %c0_i32 : i32, i32
  }
  func.func @transform_1(%arg0: i32) -> (i32, i32) {
    %c0_i32 = arith.constant 0 : i32
    %c0_i32_0 = arith.constant 0 : i32
    %c0_i32_1 = arith.constant 0 : i32
    return %c0_i32, %c0_i32_0 : i32, i32
  }
  func.func @transform_2(%arg0: i32) -> i32 {
    %c0_i32 = arith.constant 0 : i32
    %c0_i32_0 = arith.constant 0 : i32
    return %c0_i32 : i32
  }
  func.func @transform_3(%arg0: i32) -> (i32, i32) {
    %c0_i32 = arith.constant 0 : i32
    %c0_i32_0 = arith.constant 0 : i32
    return %arg0, %c0_i32 : i32, i32
  }
}

</mosaic_0001>

<bundles_post_ra>
// kernel: tpu_custom_call.1
= control target key start
LH: loop header
LB: loop body
LE: loop exit
PB: predicated region body
PF: predicated region fallthrough
CT: control target
= control target key end

     0   :  { %s1424_s0 = inlined_call_operand.hbm [shape: f32[16,1024], index: 0, kind: input, shape index: {}]   ;;  %s1425_s1 = inlined_call_operand.hbm [shape: f32[1024,128], index: 1, kind: input, shape index: {}]   ;;  %s1426_s2 = inlined_call_operand.<no memory space> [shape: f32[1], index: 2, kind: input, shape index: {}]   ;;  %s1427_s3 = inlined_call_operand.hbm [shape: f32[16,128], index: 3, kind: output, shape index: {}]  }
   0x1   :  { %8 = sst [smem:[#allocation2]] %s1426_s2 }
   0x2   :  { %9 = vsyncpa [#allocation4], 0 }
   0x3   :  { %11 = vsyncpa [#allocation4 + $0x1], 0 }
   0x4   :  { %12 = vsyncpa [#allocation7], 0 }
   0x5   :  { %13 = vsyncpa [#allocation5], 0 }
   0x6   :  { %15 = vsyncpa [#allocation5 + $0x1], 0  ;;  %s1217_s14 = smov 0   ;;  %s1219_s15 = smov 0  }
   0x7   :  { %s1221_s16 = smov 0   ;;  %s1223_s17 = smov 0  }
   0x8 LB: > { %s1238_s2 = sadd.s32 4294967295, %s1187_s17   ;;  %s716_s18 = sadd.s32 4294967294, %s1187_s17   ;;  %s1187_s17 = sphi %s1223_s17, %s1447_s17   ;;  %s1183_s16 = sphi %s1221_s16, %s1446_s16   ;;  %s1179_s15 = sphi %s1219_s15, %s1445_s15   ;;  %s1175_s14 = sphi %s1217_s14, %s1444_s14  }
   0x9   : > { %p41_p0 = scmp.ne.s32.totalorder %s1179_s15, %s1175_s14  ;;  %p1428_p1 = scmp.eq.s32.totalorder %s1238_s2, 0 }
   0xa   : > { %p113_p3 = scmp.eq.s32.totalorder %s716_s18, 1  ;;  %p717_p5 = scmp.ge.s32.totalorder %s1187_s17, 1 }
   0xb   : > { %p1247_p4 = por %p1428_p1, %p41_p0  ;;  %p120_p7 = scmp.lt.s32.totalorder %s1187_s17, 3 }
   0xc   : > { %p1252_p6 = por %p113_p3, %p41_p0  ;;  %s1189_s22 = smov [#allocation6]  }
   0xd   : > { %s1431_s19 = scalar_select %p1247_p4, 1, 0 }
   0xe   : > { %s1432_s20 = scalar_select %p1252_p6, 1, 0 }
   0xf   : > { %p1257_p8 = pnand %p717_p5, %p120_p7  ;;  %s132_s23 = sshll.u32 %s1189_s22, 4  ;;  %s1261_s23 = int_to_ptr.vmem [resolvable:$true] %s132_s23 }
  0x10   : > { %s1273_s25 = sadd.s32 1, %s1187_s17   ;;  %s28_s26 = sadd.s32 1, %s1183_s16 }
  0x11   : > { %s1433_s21 = scalar_select %p1257_p8, 1, 0 }
  0x12   : > { %p1008_p9 = pneg %p1257_p8  ;;  %s25_s27 = ssub.s32 %s1187_s17, %s1273_s25 }
  0x13   : > { %s1059_s30 = scalar_lea.hbm %s1425_s1, 16384 }
  0x14   : > { %p1268_p11 = pnand %p1008_p9, %p1428_p1  ;;  %p1060_p12 = scmp.ne.s32.totalorder %s1425_s1, %s1059_s30 }
  0x15   : > { %p1066_p5 = scmp.lt.u32.totalorder %s1059_s30, %s1425_s1 }
  0x16   : > { %p1061_p13 = pneg %p1268_p11 }
  0x18   : > { %p1062_p0 = pnand %p1061_p13, %p1060_p12 }
  0x1a   : > { %p1063_p3 = pneg %p1062_p0 }
  0x1c   : > { %p1068_p7 = pnand %p1066_p5, %p1063_p3 }
  0x1e   : > { %1071 = shalt.err (!%p1068_p7)
}
  0x1f   : > { %s1072_s8 = scalar_lea.vmem %s1261_s23, 16384  ;;  %p1080_p2 = scmp.lt.s32.totalorder %s1261_s23, %s1261_s23 }
  0x20   : > { %p1073_p9 = scmp.ne.s32.totalorder %s1261_s23, %s1072_s8  ;;  %p1081_p6 = scmp.lt.s32.totalorder %s1072_s8, %s1072_s8 }
  0x22   : > { %p1075_p10 = pnand %p1073_p9, %p1061_p13  ;;  %p1082_p4 = por %p1081_p6, %p1080_p2 }
  0x24   : > { %p1076_p1 = pneg %p1075_p10 }
  0x26   : > { %p1083_p8 = pnand %p1082_p4, %p1076_p1 }
  0x28   : > { %1086 = shalt.err (!%p1083_p8)
}
  0x29   : > { %s1190_s9 = smov 128   ;;  %s1191_s10 = smov 8  }
  0x2a   : > { %1011 = dma.hbm_to_vmem [thread:$0]  (!%p1268_p11), %s1425_s1, 16384, %s1261_s23, [#allocation7], %s1190_s9, %s1190_s9, %s1191_s10  }
  0x2b   : > { %p26_p2 = scmp.eq.s32.totalorder %s25_s27, 0  ;;  %p35_p1 = scmp.ne.s32.totalorder %s1183_s16, %s1179_s15 }
  0x2c   : > { %p36_p4 = scmp.eq.s32.totalorder %s1187_s17, 0  ;;  %p1021_p6 = scmp.lt.s32.totalorder %s1187_s17, 2 }
  0x2d   : > { %s1304_s13 = scalar_select %p26_p2, %s1183_s16, %s28_s26  }
  0x2e   : > { %p37_p8 = por %p36_p4, %p35_p1  ;;  %p1435_p10 = scmp.eq.s32.totalorder %s1238_s2, 1 }
  0x2f   : > { %s149_s22 = sand.u32 1, %s1183_s16   ;;  %s731_s28 = sshll.u32 %s1187_s17, 10 }
  0x30   : > { %p1308_p12 = por %p1435_p10, %p35_p1  ;;  %s720_s29 = sshll.u32 %s149_s22, 6 }
  0x31   : > { %s1317_s4 = scalar_lea.hbm %s1424_s0, %s731_s28  ;;  %s153_s23 = scalar_lea.vmem [#allocation3], %s720_s29 }
  0x32   : > { %s161_s26 = sshll.u32 %s153_s23, 4  ;;  %p1319_p11 = pnand %p1021_p6, %p37_p8  ;;  %s1323_s26 = int_to_ptr.vmem [resolvable:$true] %s161_s26 }
  0x33   : > { %s150_s5 = scalar_lea.sflag [#allocation4], %s149_s22  ;;  %s1087_s6 = scalar_lea.hbm %s1317_s4, 1024 }
  0x34   : > { %p1088_p13 = scmp.ne.s32.totalorder %s1317_s4, %s1087_s6  ;;  %p1089_p0 = pneg %p1319_p11 }
  0x35   : > { %s1092_s9 = scalar_lea.hbm %s1424_s0, 2048  ;;  %p1093_p7 = scmp.lt.u32.totalorder %s1317_s4, %s1424_s0 }
  0x36   : > { %p1090_p3 = pnand %p1089_p0, %p1088_p13  ;;  %p1094_p9 = scmp.lt.u32.totalorder %s1092_s9, %s1087_s6 }
  0x37   : > { %p1096_p1 = scmp.lt.u32.totalorder %s1087_s6, %s1317_s4 }
  0x38   : > { %p1091_p5 = pneg %p1090_p3  ;;  %p1095_p2 = por %p1094_p9, %p1093_p7 }
  0x3a   : > { %p1097_p4 = por %p1096_p1, %p1095_p2 }
  0x3c   : > { %p1098_p6 = pnand %p1097_p4, %p1091_p5 }
  0x3e   : > { %1101 = shalt.err (!%p1098_p6)
}
  0x3f   : > { %s1102_s12 = scalar_lea.vmem %s1323_s26, 1024  ;;  %s1192_s22 = smov [#allocation3]  }
  0x40   : > { %p1103_p8 = scmp.ne.s32.totalorder %s1323_s26, %s1102_s12  ;;  %s1107_s28 = sshll.u32 %s1192_s22, 4  ;;  %s1108_s28 = int_to_ptr.vmem [resolvable:$false] %s1107_s28 }
  0x41   : > { %s1109_s29 = scalar_lea.vmem %s1108_s28, 2048  ;;  %p1110_p3 = scmp.lt.s32.totalorder %s1323_s26, %s1108_s28 }
  0x42   : > { %p1105_p10 = pnand %p1103_p8, %p1089_p0  ;;  %p1111_p7 = scmp.lt.s32.totalorder %s1109_s29, %s1102_s12 }
  0x44   : > { %p1106_p13 = pneg %p1105_p10  ;;  %p1112_p9 = por %p1111_p7, %p1110_p3 }
  0x46   : > { %p1113_p2 = pnand %p1112_p9, %p1106_p13 }
  0x48   : > { %1116 = shalt.err (!%p1113_p2)
}
  0x49   : > { %1015 = dma.hbm_to_vmem [thread:$0]  (!%p1319_p11), %s1317_s4, 1024, %s1323_s26, %s150_s5  }
  0x4a   : > { %p1438_p5 = scmp.ne.s32.totalorder %s1433_s21, 0 }
  0x4b   : > { %s1353_s24 = sand.u32 (!%p1438_p5), 1, %s1179_s15   ;;  %p1439_p0 = scmp.ne.s32.totalorder (!%p1438_p5), %s1431_s19, 0 }
  0x4c   : > { %170 = sbr.rel (%p1438_p5) target bundleno = 387 (0x183), region = 32  ;;  %s724_s30 = sshll.u32 (!%p1438_p5), %s1353_s24, 6 }
  0x4d   : > { %s173_s23 = scalar_lea.sflag (!%p1438_p5), [#allocation4], %s1353_s24  ;;  %s1357_s6 = scalar_lea.vmem (!%p1438_p5), [#allocation3], %s724_s30 }
  0x53   : > { %1162 = dma.done.wait (%p1439_p0), %s173_s23, 1024  }
  0x54   : > { %1164 = vsyncadd (%p1439_p0), %s173_s23, 4294966272  ;;  %p1440_p11 = scmp.eq.s32.totalorder %s1238_s2, 0 }
  0x56   : > { %1166 = dma.done.wait (%p1440_p11), [#allocation7], 16384   ;;  %p1441_p1 = pmov %p1440_p11 }
  0x57   : > { %v227_v0 = vld [vmem:[#allocation6 + $0x80] sm:$0xff]  ;;  %v228_v1 = vld [vmem:[#allocation6 + $0x88] sm:$0xff]  ;;  %v229_v11 = vld [vmem:[#allocation6 + $0x90] sm:$0xff]  ;;  %s339_s19 = sld [smem:[#allocation2]]  ;;  %s726_s21 = sshll.u32 %s1353_s24, 3 }
  0x58   : > { %1168 = vsyncadd (%p1441_p1), [#allocation7], 4294950912  ;;  %v211_v2 = vld [vmem:[#allocation6] sm:$0xff]  ;;  %v872_v3 = vpack.c.bf16 %v228_v1, %v227_v0  ;;  %v212_v4 = vld [vmem:[#allocation6 + $0x8] sm:$0xff]  ;;  %s728_s4 = sshll.u32 %s1238_s2, 7  ;;  %s202_s26 = scalar_lea.vmem [#allocation8], %s726_s21 }
  0x59   : > { %v259_v5 = vld [vmem:[#allocation6 + $0x180] sm:$0xff]  ;;  %v260_v6 = vld [vmem:[#allocation6 + $0x188] sm:$0xff]  ;;  %v874_v7 = vpack.c.bf16 %v212_v4, %v211_v2  ;;  %v230_v13 = vld [vmem:[#allocation6 + $0x98] sm:$0xff]  ;;  %s636_s27 = sshll.u32 %s202_s26, 4  ;;  %s1380_s8 = scalar_lea.hbm %s1427_s3, %s728_s4  ;;  %s1382_s27 = int_to_ptr.vmem [resolvable:$true] %s636_s27 }
  0x5a   : > { %v904_v8 = vpack.c.bf16 %v260_v6, %v259_v5  ;;  %v243_v9 = vld [vmem:[#allocation6 + $0x100] sm:$0xff]  ;;  %v244_v10 = vld [vmem:[#allocation6 + $0x108] sm:$0xff]  ;;  %873 = vmatprep.subr.bf16.mxu0 %v872_v3  ;;  %v213_v14 = vld [vmem:[#allocation6 + $0x10] sm:$0xff]  ;;  %v876_v16 = vpack.c.bf16 %v230_v13, %v229_v11  ;;  %s623_s9 = scalar_lea.sflag [#allocation5], %s1353_s24  ;;  %s1117_s10 = scalar_lea.vmem %s1382_s27, 128 }
  0x5b   : > { %v906_v12 = vpack.c.bf16 %v244_v10, %v243_v9  ;;  %v214_v15 = vld [vmem:[#allocation6 + $0x18] sm:$0xff]  ;;  %875 = vmatpush3.bf16.msra.mxu0 %v874_v7  ;;  %v261_v18 = vld [vmem:[#allocation6 + $0x190] sm:$0xff]  ;;  %v231_v23 = vld [vmem:[#allocation6 + $0xa0] sm:$0xff]  ;;  %p1118_p4 = scmp.ne.s32.totalorder %s1382_s27, %s1117_s10  ;;  %s1193_s2 = smov [#allocation8]  }
  0x5c   : > { %905 = vmatprep.subr.bf16.mxu1 %v904_v8  ;;  %v878_v17 = vpack.c.bf16 %v214_v15, %v213_v14  ;;  %v262_v19 = vld [vmem:[#allocation6 + $0x198] sm:$0xff]  ;;  %v245_v20 = vld [vmem:[#allocation6 + $0x110] sm:$0xff]  ;;  %v232_v24 = vld [vmem:[#allocation6 + $0xa8] sm:$0xff]  ;;  %877 = vmatprep.subr.bf16.mxu0 %v876_v16  ;;  %s1121_s11 = sshll.u32 %s1193_s2, 4  ;;  %s1122_s11 = int_to_ptr.vmem [resolvable:$false] %s1121_s11 }
  0x5d   : > { %907 = vmatpush3.bf16.msra.mxu1 %v906_v12  ;;  %v908_v21 = vpack.c.bf16 %v262_v19, %v261_v18  ;;  %v246_v22 = vld [vmem:[#allocation6 + $0x118] sm:$0xff]  ;;  %v880_v26 = vpack.c.bf16 %v232_v24, %v231_v23  ;;  %v215_v27 = vld [vmem:[#allocation6 + $0x20] sm:$0xff]  ;;  %v216_v28 = vld [vmem:[#allocation6 + $0x28] sm:$0xff]  ;;  %p1119_p6 = pnand %p1118_p4, %p1308_p12  ;;  %s1123_s12 = scalar_lea.vmem %s1122_s11, 256 }
  0x5e   : > { %v910_v25 = vpack.c.bf16 %v246_v22, %v245_v20  ;;  %v263_v29 = vld [vmem:[#allocation6 + $0x1a0] sm:$0xff]  ;;  %v264_v30 = vld [vmem:[#allocation6 + $0x1a8] sm:$0xff]  ;;  %v882_v33 = vpack.c.bf16 %v216_v28, %v215_v27  ;;  %v233_v35 = vld [vmem:[#allocation6 + $0xb0] sm:$0xff]  ;;  %p1124_p10 = scmp.lt.s32.totalorder %s1382_s27, %s1122_s11  ;;  %p1125_p13 = scmp.lt.s32.totalorder %s1123_s12, %s1117_s10 }
  0x5f   : > { %909 = vmatprep.subr.bf16.mxu1 %v908_v21  ;;  %v247_v31 = vld [vmem:[#allocation6 + $0x120] sm:$0xff]  ;;  %v248_v32 = vld [vmem:[#allocation6 + $0x128] sm:$0xff]  ;;  %879 = vmatpush3.bf16.msra.mxu0 %v878_v17  ;;  %v912_v34 = vpack.c.bf16 %v264_v30, %v263_v29  ;;  %v234_v36 = vld [vmem:[#allocation6 + $0xb8] sm:$0xff]  ;;  %p1120_p8 = pneg %p1119_p6 }
  0x60   : > { %v217_v37 = vld [vmem:[#allocation6 + $0x30] sm:$0xff]  ;;  %881 = vmatprep.subr.bf16.mxu0 %v880_v26  ;;  %v914_v38 = vpack.c.bf16 %v248_v32, %v247_v31  ;;  %v884_v39 = vpack.c.bf16 %v234_v36, %v233_v35  ;;  %v218_v40 = vld [vmem:[#allocation6 + $0x38] sm:$0xff]  ;;  %v235_v46 = vld [vmem:[#allocation6 + $0xc0] sm:$0xff]  ;;  %p1126_p3 = por %p1125_p13, %p1124_p10 }
  0x61   : > { %911 = vmatpush3.bf16.msra.mxu1 %v910_v25  ;;  %v265_v41 = vld [vmem:[#allocation6 + $0x1b0] sm:$0xff]  ;;  %v266_v42 = vld [vmem:[#allocation6 + $0x1b8] sm:$0xff]  ;;  %v236_v47 = vld [vmem:[#allocation6 + $0xc8] sm:$0xff]  ;;  %v886_v48 = vpack.c.bf16 %v218_v40, %v217_v37 }
  0x62   : > { %913 = vmatprep.subr.bf16.mxu1 %v912_v34  ;;  %v916_v43 = vpack.c.bf16 %v266_v42, %v265_v41  ;;  %v249_v44 = vld [vmem:[#allocation6 + $0x130] sm:$0xff]  ;;  %v250_v45 = vld [vmem:[#allocation6 + $0x138] sm:$0xff]  ;;  %v267_v49 = vld [vmem:[#allocation6 + $0x1c0] sm:$0xff]  ;;  %v888_v52 = vpack.c.bf16 %v236_v47, %v235_v46  ;;  %p1127_p7 = pnand %p1126_p3, %p1120_p8 }
  0x63   : > { %883 = vmatpush3.bf16.msra.mxu0 %v882_v33  ;;  %v268_v50 = vld [vmem:[#allocation6 + $0x1c8] sm:$0xff]  ;;  %v918_v51 = vpack.c.bf16 %v250_v45, %v249_v44  ;;  %v219_v53 = vld [vmem:[#allocation6 + $0x40] sm:$0xff]  ;;  %v237_v58 = vld [vmem:[#allocation6 + $0xd0] sm:$0xff] }
  0x64   : > { %885 = vmatprep.subr.bf16.mxu0 %v884_v39  ;;  %v220_v54 = vld [vmem:[#allocation6 + $0x48] sm:$0xff]  ;;  %v251_v55 = vld [vmem:[#allocation6 + $0x140] sm:$0xff]  ;;  %v920_v56 = vpack.c.bf16 %v268_v50, %v267_v49  ;;  %v238_v59 = vld [vmem:[#allocation6 + $0xd8] sm:$0xff] }
  0x65   : > { %915 = vmatpush3.bf16.msra.mxu1 %v914_v38  ;;  %v252_v57 = vld [vmem:[#allocation6 + $0x148] sm:$0xff]  ;;  %v269_v60 = vld [vmem:[#allocation6 + $0x1d0] sm:$0xff]  ;;  %v270_v61 = vld [vmem:[#allocation6 + $0x1d8] sm:$0xff]  ;;  %v890_v62 = vpack.c.bf16 %v220_v54, %v219_v53  ;;  %v892_v0 = vpack.c.bf16 %v238_v59, %v237_v58 }
  0x66   : > { %917 = vmatprep.subr.bf16.mxu1 %v916_v43  ;;  %v922_v63 = vpack.c.bf16 %v252_v57, %v251_v55  ;;  %v221_v1 = vld [vmem:[#allocation6 + $0x50] sm:$0xff]  ;;  %v222_v2 = vld [vmem:[#allocation6 + $0x58] sm:$0xff]  ;;  %v924_v4 = vpack.c.bf16 %v270_v61, %v269_v60  ;;  %v239_v6 = vld [vmem:[#allocation6 + $0xe0] sm:$0xff] }
  0x67   : > { %887 = vmatpush3.bf16.msra.mxu0 %v886_v48  ;;  %v253_v3 = vld [vmem:[#allocation6 + $0x150] sm:$0xff]  ;;  %v254_v5 = vld [vmem:[#allocation6 + $0x158] sm:$0xff]  ;;  %v240_v7 = vld [vmem:[#allocation6 + $0xe8] sm:$0xff]  ;;  %v894_v10 = vpack.c.bf16 %v222_v2, %v221_v1 }
  0x68   : > { %889 = vmatprep.subr.bf16.mxu0 %v888_v52  ;;  %v271_v8 = vld [vmem:[#allocation6 + $0x1e0] sm:$0xff]  ;;  %v272_v9 = vld [vmem:[#allocation6 + $0x1e8] sm:$0xff]  ;;  %v926_v13 = vpack.c.bf16 %v254_v5, %v253_v3  ;;  %v896_v14 = vpack.c.bf16 %v240_v7, %v239_v6  ;;  %v241_v19 = vld [vmem:[#allocation6 + $0xf0] sm:$0xff] }
  0x69   : > { %919 = vmatpush3.bf16.msra.mxu1 %v918_v51  ;;  %v223_v11 = vld [vmem:[#allocation6 + $0x60] sm:$0xff]  ;;  %v224_v12 = vld [vmem:[#allocation6 + $0x68] sm:$0xff]  ;;  %v928_v18 = vpack.c.bf16 %v272_v9, %v271_v8  ;;  %v242_v20 = vld [vmem:[#allocation6 + $0xf8] sm:$0xff] }
  0x6a   : > { %921 = vmatprep.subr.bf16.mxu1 %v920_v56  ;;  %v255_v15 = vld [vmem:[#allocation6 + $0x160] sm:$0xff]  ;;  %v256_v16 = vld [vmem:[#allocation6 + $0x168] sm:$0xff]  ;;  %v206_v21 = vld [vmem:[%s1357_s6 + $0x18] sm:$0xff]  ;;  %v898_v24 = vpack.c.bf16 %v224_v12, %v223_v11  ;;  %v900_v26 = vpack.c.bf16 %v242_v20, %v241_v19 }
  0x6b   : > { %891 = vmatpush3.bf16.msra.mxu0 %v890_v62  ;;  %v204_v17 = vld [vmem:[%s1357_s6 + $0x8] sm:$0xff]  ;;  %v273_v22 = vld [vmem:[#allocation6 + $0x1f0] sm:$0xff]  ;;  %v274_v23 = vld [vmem:[#allocation6 + $0x1f8] sm:$0xff]  ;;  %475 = vmatprep.mubr.f32.mxu1 %v206_v21  ;;  %v930_v25 = vpack.c.bf16 %v256_v16, %v255_v15 }
  0x6c   : > { %893 = vmatprep.subr.bf16.mxu0 %v892_v0  ;;  %405 = vmatprep.mubr.f32.mxu0 %v204_v17  ;;  %v225_v27 = vld [vmem:[#allocation6 + $0x70] sm:$0xff]  ;;  %v226_v28 = vld [vmem:[#allocation6 + $0x78] sm:$0xff]  ;;  %v932_v30 = vpack.c.bf16 %v274_v23, %v273_v22  ;;  %v291_v32 = vld [vmem:[#allocation6 + $0x280] sm:$0xff] }
  0x6d   : > { %923 = vmatpush3.bf16.msra.mxu1 %v922_v63  ;;  %v257_v29 = vld [vmem:[#allocation6 + $0x170] sm:$0xff]  ;;  %v258_v31 = vld [vmem:[#allocation6 + $0x178] sm:$0xff]  ;;  %v292_v33 = vld [vmem:[#allocation6 + $0x288] sm:$0xff]  ;;  %v902_v36 = vpack.c.bf16 %v226_v28, %v225_v27 }
  0x6e   : > { %925 = vmatprep.subr.bf16.mxu1 %v924_v4  ;;  %v323_v34 = vld [vmem:[#allocation6 + $0x380] sm:$0xff]  ;;  %v324_v35 = vld [vmem:[#allocation6 + $0x388] sm:$0xff]  ;;  %v934_v37 = vpack.c.bf16 %v258_v31, %v257_v29  ;;  %v936_v38 = vpack.c.bf16 %v292_v33, %v291_v32  ;;  %v293_v44 = vld [vmem:[#allocation6 + $0x290] sm:$0xff] }
  0x6f   : > { %895 = vmatpush3.bf16.msra.mxu0 %v894_v10  ;;  %v275_v39 = vld [vmem:[#allocation6 + $0x200] sm:$0xff]  ;;  %v276_v40 = vld [vmem:[#allocation6 + $0x208] sm:$0xff]  ;;  %v968_v42 = vpack.c.bf16 %v324_v35, %v323_v34  ;;  %v294_v45 = vld [vmem:[#allocation6 + $0x298] sm:$0xff] }
  0x70   : > { %897 = vmatprep.subr.bf16.mxu0 %v896_v14  ;;  %v307_v41 = vld [vmem:[#allocation6 + $0x300] sm:$0xff]  ;;  %v308_v43 = vld [vmem:[#allocation6 + $0x308] sm:$0xff]  ;;  %v325_v46 = vld [vmem:[#allocation6 + $0x390] sm:$0xff]  ;;  %v938_v49 = vpack.c.bf16 %v276_v40, %v275_v39  ;;  %v940_v52 = vpack.c.bf16 %v294_v45, %v293_v44 }
  0x71   : > { %927 = vmatpush3.bf16.msra.mxu1 %v926_v13  ;;  %v326_v47 = vld [vmem:[#allocation6 + $0x398] sm:$0xff]  ;;  %v203_v48 = vld [vmem:[%s1357_s6] sm:$0xff]  ;;  %v205_v50 = vld [vmem:[%s1357_s6 + $0x10] sm:$0xff]  ;;  %v970_v51 = vpack.c.bf16 %v308_v43, %v307_v41 }
  0x72   : > { %929 = vmatprep.subr.bf16.mxu1 %v928_v18  ;;  %v277_v53 = vld [vmem:[#allocation6 + $0x210] sm:$0xff]  ;;  %v278_v54 = vld [vmem:[#allocation6 + $0x218] sm:$0xff]  ;;  %v972_v56 = vpack.c.bf16 %v326_v47, %v325_v46  ;;  %v295_v58 = vld [vmem:[#allocation6 + $0x2a0] sm:$0xff] }
  0x73   : > { %899 = vmatpush3.bf16.msra.mxu0 %v898_v24  ;;  %v309_v55 = vld [vmem:[#allocation6 + $0x310] sm:$0xff]  ;;  %v310_v57 = vld [vmem:[#allocation6 + $0x318] sm:$0xff]  ;;  %v296_v59 = vld [vmem:[#allocation6 + $0x2a8] sm:$0xff]  ;;  %v942_v62 = vpack.c.bf16 %v278_v54, %v277_v53 }
  0x74   : > { %901 = vmatprep.subr.bf16.mxu0 %v900_v26  ;;  %v327_v60 = vld [vmem:[#allocation6 + $0x3a0] sm:$0xff]  ;;  %v328_v61 = vld [vmem:[#allocation6 + $0x3a8] sm:$0xff]  ;;  %v974_v63 = vpack.c.bf16 %v310_v57, %v309_v55  ;;  %v944_v0 = vpack.c.bf16 %v296_v59, %v295_v58  ;;  %v297_v6 = vld [vmem:[#allocation6 + $0x2b0] sm:$0xff] }
  0x75   : > { %931 = vmatpush3.bf16.msra.mxu1 %v930_v25  ;;  %v279_v1 = vld [vmem:[#allocation6 + $0x220] sm:$0xff]  ;;  %v280_v2 = vld [vmem:[#allocation6 + $0x228] sm:$0xff]  ;;  %v976_v4 = vpack.c.bf16 %v328_v61, %v327_v60  ;;  %v298_v7 = vld [vmem:[#allocation6 + $0x2b8] sm:$0xff] }
  0x76   : > { %933 = vmatprep.subr.bf16.mxu1 %v932_v30  ;;  %v311_v3 = vld [vmem:[#allocation6 + $0x320] sm:$0xff]  ;;  %v312_v5 = vld [vmem:[#allocation6 + $0x328] sm:$0xff]  ;;  %v329_v8 = vld [vmem:[#allocation6 + $0x3b0] sm:$0xff]  ;;  %v946_v10 = vpack.c.bf16 %v280_v2, %v279_v1  ;;  %v948_v12 = vpack.c.bf16 %v298_v7, %v297_v6 }
  0x77   : > { %903 = vmatpush3.bf16.msra.mxu0 %v902_v36  ;;  %v330_v9 = vld [vmem:[#allocation6 + $0x3b8] sm:$0xff]  ;;  %v978_v11 = vpack.c.bf16 %v312_v5, %v311_v3  ;;  %v281_v13 = vld [vmem:[#allocation6 + $0x230] sm:$0xff]  ;;  %v299_v18 = vld [vmem:[#allocation6 + $0x2c0] sm:$0xff] }
  0x78   : > { %937 = vmatprep.subr.bf16.mxu0 %v936_v38  ;;  %v282_v14 = vld [vmem:[#allocation6 + $0x238] sm:$0xff]  ;;  %v313_v15 = vld [vmem:[#allocation6 + $0x330] sm:$0xff]  ;;  %v980_v16 = vpack.c.bf16 %v330_v9, %v329_v8  ;;  %v300_v19 = vld [vmem:[#allocation6 + $0x2c8] sm:$0xff]  ;;  %v340_v9 = vstv %s339_s19 }
  0x79   : > { %935 = vmatpush3.bf16.msra.mxu1 %v934_v37  ;;  %v314_v17 = vld [vmem:[#allocation6 + $0x338] sm:$0xff]  ;;  %v331_v20 = vld [vmem:[#allocation6 + $0x3c0] sm:$0xff]  ;;  %v332_v21 = vld [vmem:[#allocation6 + $0x3c8] sm:$0xff]  ;;  %v950_v22 = vpack.c.bf16 %v282_v14, %v281_v13  ;;  %v952_v26 = vpack.c.bf16 %v300_v19, %v299_v18 }
  0x7a   : > { %969 = vmatprep.subr.bf16.mxu1 %v968_v42  ;;  %406 = vmatmul.mubr.f32.vlgmr.msra.gmra.mrb[0].mxu0 %v203_v48  ;;  %v208_v23 = vld [vmem:[%s1357_s6 + $0x28] sm:$0xff]  ;;  %v210_v24 = vld [vmem:[%s1357_s6 + $0x38] sm:$0xff]  ;;  %v982_v25 = vpack.c.bf16 %v314_v17, %v313_v15  ;;  %v283_v27 = vld [vmem:[#allocation6 + $0x240] sm:$0xff]  ;;  %v984_v30 = vpack.c.bf16 %v332_v21, %v331_v20 }
  0x7b   : > { %939 = vmatpush3.bf16.msra.mxu0 %v938_v49  ;;  %v284_v28 = vld [vmem:[#allocation6 + $0x248] sm:$0xff]  ;;  %v315_v29 = vld [vmem:[#allocation6 + $0x340] sm:$0xff]  ;;  %v301_v32 = vld [vmem:[#allocation6 + $0x2d0] sm:$0xff]  ;;  %545 = vmatprep.mubr.f32.mxu0 %v208_v23 }
  0x7c   : > { %476 = vmatmul.mubr.f32.vlgmr.msra.gmra.mrb[0].mxu1 %v205_v50  ;;  %941 = vmatprep.subr.bf16.mxu0 %v940_v52  ;;  %v316_v31 = vld [vmem:[#allocation6 + $0x348] sm:$0xff]  ;;  %v302_v33 = vld [vmem:[#allocation6 + $0x2d8] sm:$0xff]  ;;  %v333_v34 = vld [vmem:[#allocation6 + $0x3d0] sm:$0xff]  ;;  %v954_v36 = vpack.c.bf16 %v284_v28, %v283_v27 }
  0x7d   : > { %971 = vmatpush3.bf16.msra.mxu1 %v970_v51  ;;  %v334_v35 = vld [vmem:[#allocation6 + $0x3d8] sm:$0xff]  ;;  %615 = vmatprep.mubr.f32.mxu1 %v210_v24  ;;  %v986_v37 = vpack.c.bf16 %v316_v31, %v315_v29  ;;  %v956_v38 = vpack.c.bf16 %v302_v33, %v301_v32  ;;  %v285_v39 = vld [vmem:[#allocation6 + $0x250] sm:$0xff]  ;;  %v303_v44 = vld [vmem:[#allocation6 + $0x2e0] sm:$0xff] }
  0x7e   : > { %973 = vmatprep.subr.bf16.mxu1 %v972_v56  ;;  %v286_v40 = vld [vmem:[#allocation6 + $0x258] sm:$0xff]  ;;  %v317_v41 = vld [vmem:[#allocation6 + $0x350] sm:$0xff]  ;;  %v988_v42 = vpack.c.bf16 %v334_v35, %v333_v34  ;;  %v304_v45 = vld [vmem:[#allocation6 + $0x2e8] sm:$0xff] }
  0x7f   : > { %943 = vmatpush3.bf16.msra.mxu0 %v942_v62  ;;  %v318_v43 = vld [vmem:[#allocation6 + $0x358] sm:$0xff]  ;;  %v335_v46 = vld [vmem:[#allocation6 + $0x3e0] sm:$0xff]  ;;  %v336_v47 = vld [vmem:[#allocation6 + $0x3e8] sm:$0xff]  ;;  %v958_v48 = vpack.c.bf16 %v286_v40, %v285_v39  ;;  %v960_v50 = vpack.c.bf16 %v304_v45, %v303_v44 }
  0x80   : > { %945 = vmatprep.subr.bf16.mxu0 %v944_v0  ;;  %v990_v49 = vpack.c.bf16 %v318_v43, %v317_v41  ;;  %v287_v51 = vld [vmem:[#allocation6 + $0x260] sm:$0xff]  ;;  %v288_v52 = vld [vmem:[#allocation6 + $0x268] sm:$0xff]  ;;  %v992_v54 = vpack.c.bf16 %v336_v47, %v335_v46  ;;  %v305_v56 = vld [vmem:[#allocation6 + $0x2f0] sm:$0xff] }
  0x81   : > { %975 = vmatpush3.bf16.msra.mxu1 %v974_v63  ;;  %v319_v53 = vld [vmem:[#allocation6 + $0x360] sm:$0xff]  ;;  %v320_v55 = vld [vmem:[#allocation6 + $0x368] sm:$0xff]  ;;  %v306_v57 = vld [vmem:[#allocation6 + $0x2f8] sm:$0xff]  ;;  %v962_v60 = vpack.c.bf16 %v288_v52, %v287_v51 }
  0x82   : > { %977 = vmatprep.subr.bf16.mxu1 %v976_v4  ;;  %v337_v58 = vld [vmem:[#allocation6 + $0x3f0] sm:$0xff]  ;;  %v338_v59 = vld [vmem:[#allocation6 + $0x3f8] sm:$0xff]  ;;  %v994_v61 = vpack.c.bf16 %v320_v55, %v319_v53  ;;  %v964_v62 = vpack.c.bf16 %v306_v57, %v305_v56  ;;  %v207_v6 = vld [vmem:[%s1357_s6 + $0x20] sm:$0xff] }
  0x83   : > { %947 = vmatpush3.bf16.msra.mxu0 %v946_v10  ;;  %v289_v63 = vld [vmem:[#allocation6 + $0x270] sm:$0xff]  ;;  %v290_v0 = vld [vmem:[#allocation6 + $0x278] sm:$0xff]  ;;  %v996_v1 = vpack.c.bf16 %v338_v59, %v337_v58 }
  0x84   : > { %949 = vmatprep.subr.bf16.mxu0 %v948_v12  ;;  %v321_v2 = vld [vmem:[#allocation6 + $0x370] sm:$0xff]  ;;  %v322_v3 = vld [vmem:[#allocation6 + $0x378] sm:$0xff]  ;;  %v966_v4 = vpack.c.bf16 %v290_v0, %v289_v63 }
  0x85   : > { %979 = vmatpush3.bf16.msra.mxu1 %v978_v11  ;;  %v998_v5 = vpack.c.bf16 %v322_v3, %v321_v2  ;;  %v209_v7 = vld [vmem:[%s1357_s6 + $0x30] sm:$0xff] }
  0x86   : > { %981 = vmatprep.subr.bf16.mxu1 %v980_v16 }
  0x87   : > { %951 = vmatpush3.bf16.msra.mxu0 %v950_v22 }
  0x88   : > { %953 = vmatprep.subr.bf16.mxu0 %v952_v26 }
  0x89   : > { %983 = vmatpush3.bf16.msra.mxu1 %v982_v25 }
  0x8a   : > { %985 = vmatprep.subr.bf16.mxu1 %v984_v30 }
  0x8b   : > { %955 = vmatpush3.bf16.msra.mxu0 %v954_v36 }
  0x8c   : > { %957 = vmatprep.subr.bf16.mxu0 %v956_v38 }
  0x8d   : > { %987 = vmatpush3.bf16.msra.mxu1 %v986_v37 }
  0x8e   : > { %989 = vmatprep.subr.bf16.mxu1 %v988_v42 }
  0x8f   : > { %959 = vmatpush3.bf16.msra.mxu0 %v958_v48 }
  0x90   : > { %961 = vmatprep.subr.bf16.mxu0 %v960_v50 }
  0x91   : > { %991 = vmatpush3.bf16.msra.mxu1 %v990_v49 }
  0x92   : > { %993 = vmatprep.subr.bf16.mxu1 %v992_v54 }
  0x93   : > { %963 = vmatpush3.bf16.msra.mxu0 %v962_v60 }
  0x94   : > { %965 = vmatprep.subr.bf16.mxu0 %v964_v62 }
  0x95   : > { %995 = vmatpush3.bf16.msra.mxu1 %v994_v61 }
  0x96   : > { %997 = vmatprep.subr.bf16.mxu1 %v996_v1 }
  0x97   : > { %967 = vmatpush3.bf16.msra.mxu0 %v966_v4 }
  0x99   : > { %999 = vmatpush3.bf16.msra.mxu1 %v998_v5 }
  0x9a   : > { %546 = vmatmul.mubr.f32.vlgmr.msra.gmra.mrb[2].mxu0 %v207_v6 }
  0x9c   : > { %616 = vmatmul.mubr.f32.vlgmr.msra.gmra.mrb[2].mxu1 %v209_v7 }
 0x14d   : > { %v764_v8 = vpop.f32.mrb[0].mxu0 }
 0x14e   : > { %v765_v10 = vpop.f32.mrb[1].mxu0 }
 0x14f   : > { %v799_v11 = vpop.f32.mrb[0].mxu1  ;;  %v766_v12 = vadd.f32 %v765_v10, %v764_v8 }
 0x150   : > { %v800_v13 = vpop.f32.mrb[1].mxu1 }
 0x151   : > { %v801_v14 = vadd.f32 %v800_v13, %v799_v11  ;;  %v408_v15 = vadd.f32 %v766_v12, %v340_v9 }
 0x153   : > { %v478_v16 = vadd.f32 %v801_v14, %v408_v15 }
 0x16d   : > { %v834_v17 = vpop.f32.mrb[2].mxu0 }
 0x16e   : > { %v835_v18 = vpop.f32.mrb[3].mxu0 }
 0x16f   : > { %v869_v19 = vpop.f32.mrb[2].mxu1  ;;  %v836_v20 = vadd.f32 %v835_v18, %v834_v17 }
 0x170   : > { %v870_v21 = vpop.f32.mrb[3].mxu1 }
 0x171   : > { %v871_v22 = vadd.f32 %v870_v21, %v869_v19  ;;  %v548_v23 = vadd.f32 %v836_v20, %v478_v16 }
 0x173   : > { %v618_v24 = vadd.f32 %v871_v22, %v548_v23 }
 0x175   : > { %621 = vst [vmem:[%s202_s26] sm:$0xff] %v618_v24 }
 0x176   : > { %1130 = shalt.err (!%p1127_p7)
}
 0x177   : > { %s1131_s22 = scalar_lea.hbm %s1380_s8, 128  ;;  %s1135_s24 = scalar_lea.hbm %s1427_s3, 256 }
 0x178   : > { %p1132_p9 = scmp.ne.s32.totalorder %s1380_s8, %s1131_s22  ;;  %p1136_p0 = scmp.lt.u32.totalorder %s1380_s8, %s1427_s3 }
 0x179   : > { %p1137_p11 = scmp.lt.u32.totalorder %s1135_s24, %s1131_s22  ;;  %p1139_p4 = scmp.lt.u32.totalorder %s1131_s22, %s1380_s8 }
 0x17a   : > { %p1133_p2 = pnand %p1132_p9, %p1308_p12 }
 0x17b   : > { %p1138_p1 = por %p1137_p11, %p1136_p0 }
 0x17c   : > { %p1134_p5 = pneg %p1133_p2 }
 0x17d   : > { %p1140_p6 = por %p1139_p4, %p1138_p1 }
 0x17f   : > { %p1141_p8 = pnand %p1140_p6, %p1134_p5 }
 0x181   : > { %1144 = shalt.err (!%p1141_p8)
}
 0x182   : > { %1006 = dma.vmem_to_hbm [thread:$0]  (%p1308_p12), %s1382_s27, 128, %s1380_s8, %s623_s9  }
 0x183 PF: > { %s648_s6 = sand.u32 1, %s1175_s14   ;;  %p1442_p10 = scmp.ne.s32.totalorder %s1432_s20, 0 }
 0x184   : > { %p1443_p13 = scmp.ge.s32.totalorder %s1187_s17, 2  ;;  %s649_s19 = scalar_lea.sflag [#allocation5], %s648_s6 }
 0x186   : > { %p1017_p3 = pnand %p1443_p13, %p1442_p10 }
 0x188   : > { %1170 = dma.done.wait (!%p1017_p3), %s649_s19, 128  }
 0x189   : > { %1172 = vsyncadd (!%p1017_p3), %s649_s19, 4294967168  ;;  %p18_p7 = scmp.ge.s32.totalorder %s1273_s25, 4   ;;  %s1444_s14 = smov %s1179_s15 }
 0x18a   : > { %s1445_s15 = smov %s1183_s16  ;;  %s1446_s16 = smov %s1304_s13 }
 0x18b   : > { %s1447_s17 = smov %s1273_s25  ;;  %20 = sbr.rel (!%p18_p7) target bundleno = 8 (0x8), region = 81 }
 0x192   :  { %654 = vsyncpa [#allocation4], 1 }
 0x193   :  { %656 = vsyncpa [#allocation4 + $0x1], 1 }
 0x194   :  { %657 = vsyncpa [#allocation7], 1 }
 0x195   :  { %658 = vsyncpa [#allocation5], 1 }
 0x196   :  { %660 = vsyncpa [#allocation5 + $0x1], 1 }

</bundles_post_ra>
